<compile_context>
chip_gen: v7x
topology: tpu7x:2x2x1
jax: 0.10.0
libtpu: 0.0.40
codegen_flags: <defaults>
</compile_context>

<pallas_src>
import functools
import math

import jax
import jax.numpy as jnp
from jax import lax
from jax.experimental import pallas as pl
from jax.experimental.pallas import tpu as pltpu


def _round_up(x, m):
    return ((x + m - 1) // m) * m


def _sublane_granule(dtype):
    isz = jnp.dtype(dtype).itemsize
    if isz >= 4:
        return 8
    if isz == 2:
        return 16
    return 32


def _vmem_limit_bytes():
    """Generation-aware scoped-VMEM limit: ~75% of physical VMEM, <= 100 MiB."""
    cap = 64 * 1024 * 1024
    try:
        info = pltpu.get_tpu_info()
        cap = int(getattr(info, "vmem_capacity_bytes", cap))
    except Exception:
        pass
    return min((cap * 3) // 4, 100 * 1024 * 1024)


def _pick_tm(row_tile, n_rows, width, cond_width, in_isz, out_isz,
             fixed_bytes, granule, vmem_limit):
    """Largest row tile (multiple of `granule`) whose working set fits VMEM."""
    per_row = (2 * width * in_isz          # x tile, double-buffered
               + 2 * width * out_isz       # out tile, double-buffered
               + 2 * cond_width * in_isz   # condition tile, double-buffered
               + 4 * width * 4             # live f32 temps (x cast, d, scale, shift)
               + cond_width * 4)           # condition cast
    budget = int(vmem_limit * 0.7) - fixed_bytes
    tm_cap = max(granule, (max(budget, 0) // max(per_row, 1)) // granule * granule)
    tm = min(row_tile, tm_cap, _round_up(n_rows, granule))
    return max(_round_up(tm, granule), granule)


# ---------------------------------------------------------------------------
# Path A: generic row-tiled kernel (hidden >= 128 or not lane-packable).
# Blocks: x [tm, H], c [tm, C]; w_scale/w_shift [C, H], biases [1, H] resident
# (single-buffered, grid-invariant).
# ---------------------------------------------------------------------------
def _adaln_rows_kernel(x_ref, c_ref, ws_ref, wh_ref, bs_ref, bh_ref, o_ref, *,
                       eps, mm_precision):
    x = x_ref[...].astype(jnp.float32)                        # [tm, H]
    c = c_ref[...].astype(jnp.float32)                        # [tm, C]

    # Two-pass stats (numerically safer; x resident so second pass is cheap).
    mean = jnp.mean(x, axis=-1, keepdims=True)                 # [tm, 1]
    d = x - mean
    var = jnp.mean(d * d, axis=-1, keepdims=True)
    inv_std = lax.rsqrt(var + eps)                             # EUP

    scale = jnp.dot(c, ws_ref[...].astype(jnp.float32),
                    preferred_element_type=jnp.float32,
                    precision=mm_precision) + bs_ref[...]
    shift = jnp.dot(c, wh_ref[...].astype(jnp.float32),
                    preferred_element_type=jnp.float32,
                    precision=mm_precision) + bh_ref[...]

    # Fused epilogue: no separate x_norm buffer.
    o_ref[...] = (d * (inv_std * scale) + shift).astype(o_ref.dtype)


def _adaln_rows_call(x2, c2, w_scale, w_shift, b_scale, b_shift, *,
                     eps, row_tile, vmem_limit):
    n_rows, hidden = x2.shape
    cond = c2.shape[-1]
    in_isz = jnp.dtype(x2.dtype).itemsize
    w_isz = jnp.dtype(w_scale.dtype).itemsize
    granule = max(_sublane_granule(x2.dtype), _sublane_granule(c2.dtype))

    fixed = 2 * cond * hidden * w_isz + 2 * hidden * 4          # weights + biases
    tm = _pick_tm(row_tile, n_rows, hidden, cond, in_isz, in_isz,
                  fixed, granule, vmem_limit)
    grid = (pl.cdiv(n_rows, tm),)   # ragged tail handled by Pallas block masking

    mm_precision = (lax.Precision.HIGHEST
                    if in_isz >= 4 and w_isz >= 4 else lax.Precision.DEFAULT)

    def weight_spec(shape):
        return pl.BlockSpec(shape, lambda i: (0, 0), pipeline_mode=pl.Buffered(1))

    kernel = functools.partial(_adaln_rows_kernel, eps=eps,
                               mm_precision=mm_precision)
    return pl.pallas_call(
        kernel,
        out_shape=jax.ShapeDtypeStruct((n_rows, hidden), x2.dtype),
        grid_spec=pltpu.PrefetchScalarGridSpec(
            num_scalar_prefetch=0,
            grid=grid,
            in_specs=[
                pl.BlockSpec((tm, hidden), lambda i: (i, 0)),
                pl.BlockSpec((tm, cond), lambda i: (i, 0)),
                weight_spec((cond, hidden)),
                weight_spec((cond, hidden)),
                weight_spec((1, hidden)),
                weight_spec((1, hidden)),
            ],
            out_specs=pl.BlockSpec((tm, hidden), lambda i: (i, 0)),
        ),
        compiler_params=pltpu.CompilerParams(
            dimension_semantics=("parallel",),
            vmem_limit_bytes=vmem_limit,
        ),
    )(x2, c2, w_scale, w_shift, b_scale, b_shift)


# ---------------------------------------------------------------------------
# Path B: lane-packed kernel for small hidden (H < 128, 128 % H == 0).
# `pack` consecutive rows fold into one 128-lane row; per-segment stats use a
# block-diagonal averaging matrix on the MXU; projection uses block-diagonal
# expanded weights.  All x / output accesses are lane-dense (unmasked vst).
# ---------------------------------------------------------------------------
def _adaln_packed_kernel(x_ref, c_ref, m_ref, ws_ref, wh_ref, bs_ref, bh_ref,
                         o_ref, *, eps, mm_precision):
    x = x_ref[...].astype(jnp.float32)                         # [tmp, 128]
    c = c_ref[...].astype(jnp.float32)                         # [tmp, pack*C]
    m = m_ref[...]                                             # [128, 128] f32

    # Per-segment two-pass stats on the MXU (mean broadcast within segments).
    mean = jnp.dot(x, m, preferred_element_type=jnp.float32,
                   precision=lax.Precision.HIGHEST)
    d = x - mean
    var = jnp.dot(d * d, m, preferred_element_type=jnp.float32,
                  precision=lax.Precision.HIGHEST)
    inv_std = lax.rsqrt(var + eps)

    scale = jnp.dot(c, ws_ref[...].astype(jnp.float32),
                    preferred_element_type=jnp.float32,
                    precision=mm_precision) + bs_ref[...]
    shift = jnp.dot(c, wh_ref[...].astype(jnp.float32),
                    preferred_element_type=jnp.float32,
                    precision=mm_precision) + bh_ref[...]

    o_ref[...] = (d * (inv_std * scale) + shift).astype(o_ref.dtype)


def _adaln_packed_call(x2, c2, packed_w, *, eps, row_tile, pack, vmem_limit):
    n_rows, hidden = x2.shape
    cond = c2.shape[-1]
    ph = pack * hidden          # == 128 (lane-dense)
    pc = pack * cond

    # Only pack-granule padding (<= pack-1 rows); tile raggedness -> cdiv grid.
    n_rows_p = _round_up(n_rows, pack)
    if n_rows_p != n_rows:
        x2 = jnp.pad(x2, ((0, n_rows_p - n_rows), (0, 0)))
        c2 = jnp.pad(c2, ((0, n_rows_p - n_rows), (0, 0)))
    n_packed = n_rows_p // pack

    xp = x2.reshape(n_packed, ph)        # free reshape (contiguous)
    cp = c2.reshape(n_packed, pc)

    m, ws, wh, bs, bh = packed_w

    in_isz = jnp.dtype(x2.dtype).itemsize
    granule = max(_sublane_granule(x2.dtype), _sublane_granule(c2.dtype))
    fixed = ph * ph * 4 + 2 * pc * ph * 4 + 2 * ph * 4
    tmp = _pick_tm(max(row_tile // pack, granule), n_packed, ph, pc,
                   in_isz, in_isz, fixed, granule, vmem_limit)
    grid = (pl.cdiv(n_packed, tmp),)

    mm_precision = (lax.Precision.HIGHEST if in_isz >= 4
                    else lax.Precision.DEFAULT)

    def weight_spec(shape):
        return pl.BlockSpec(shape, lambda i: (0, 0), pipeline_mode=pl.Buffered(1))

    kernel = functools.partial(_adaln_packed_kernel, eps=eps,
                               mm_precision=mm_precision)
    out = pl.pallas_call(
        kernel,
        out_shape=jax.ShapeDtypeStruct((n_packed, ph), x2.dtype),
        grid_spec=pltpu.PrefetchScalarGridSpec(
            num_scalar_prefetch=0,
            grid=grid,
            in_specs=[
                pl.BlockSpec((tmp, ph), lambda i: (i, 0)),
                pl.BlockSpec((tmp, pc), lambda i: (i, 0)),
                weight_spec((ph, ph)),
                weight_spec((pc, ph)),
                weight_spec((pc, ph)),
                weight_spec((1, ph)),
                weight_spec((1, ph)),
            ],
            out_specs=pl.BlockSpec((tmp, ph), lambda i: (i, 0)),
        ),
        compiler_params=pltpu.CompilerParams(
            dimension_semantics=("parallel",),
            vmem_limit_bytes=vmem_limit,
        ),
    )(xp, cp, m, ws, wh, bs, bh)

    return out.reshape(n_rows_p, hidden)[:n_rows]


# ---------------------------------------------------------------------------
# Weight preparation (hoist out of the hot path; cache the result per layer).
# w_t = projector.weight.T (shape [C, 2H]); bias = projector.bias ([2H]).
# ---------------------------------------------------------------------------
def prepare_adaln(w_t, bias, hidden):
    cond = w_t.shape[0]
    assert w_t.shape == (cond, 2 * hidden)
    assert bias.shape == (2 * hidden,)
    w_scale = w_t[:, :hidden]
    w_shift = w_t[:, hidden:]
    b_scale = bias[:hidden].astype(jnp.float32).reshape(1, hidden)
    b_shift = bias[hidden:].astype(jnp.float32).reshape(1, hidden)

    pack = 128 // hidden if (hidden < 128 and 128 % hidden == 0) else 1
    packed = None
    if pack > 1:
        eye = jnp.eye(pack, dtype=jnp.float32)
        m = jnp.kron(eye, jnp.full((hidden, hidden), 1.0 / hidden, jnp.float32))
        ws = jnp.kron(eye, w_scale.astype(jnp.float32))      # [pack*C, 128]
        wh = jnp.kron(eye, w_shift.astype(jnp.float32))      # [pack*C, 128]
        bs = jnp.tile(b_scale, (1, pack))                    # [1, 128]
        bh = jnp.tile(b_shift, (1, pack))                    # [1, 128]
        packed = (m, ws, wh, bs, bh)

    return dict(hidden=hidden, cond=cond, pack=pack,
                split=(w_scale, w_shift, b_scale, b_shift), packed=packed)


def adaptive_layer_norm_apply(prepared, x, condition, *, eps=1e-12,
                              row_tile=1024):
    hidden, cond, pack = prepared["hidden"], prepared["cond"], prepared["pack"]
    assert x.shape[-1] == hidden
    assert condition.shape[-1] == cond
    assert condition.shape[:-1] == x.shape[:-1]

    lead = x.shape[:-1]
    n_rows = math.prod(lead) if lead else 1
    x2 = x.reshape(n_rows, hidden)
    c2 = condition.reshape(n_rows, cond)

    vmem_limit = _vmem_limit_bytes()
    if pack > 1:
        out2 = _adaln_packed_call(x2, c2, prepared["packed"], eps=eps,
                                  row_tile=row_tile, pack=pack,
                                  vmem_limit=vmem_limit)
    else:
        ws, wh, bs, bh = prepared["split"]
        out2 = _adaln_rows_call(x2, c2, ws, wh, bs, bh, eps=eps,
                                row_tile=row_tile, vmem_limit=vmem_limit)
    return out2.reshape(*lead, hidden)


def adaptive_layer_norm(x, condition, w_t, bias, *, eps=1e-12, row_tile=1024):
    """Convenience wrapper; inference loops should cache prepare_adaln(...)."""
    prepared = prepare_adaln(w_t, bias, x.shape[-1])
    return adaptive_layer_norm_apply(prepared, x, condition, eps=eps,
                                     row_tile=row_tile)


def adaptive_layer_norm_ref(x, condition, w_t, bias, *, eps=1e-12):
    """Pure-JAX reference mirroring the PyTorch module (f32 math)."""
    xf = x.astype(jnp.float32)
    mean = jnp.mean(xf, axis=-1, keepdims=True)
    var = jnp.mean((xf - mean) ** 2, axis=-1, keepdims=True)
    x_norm = (xf - mean) / jnp.sqrt(var + eps)
    ss = jnp.dot(condition.astype(jnp.float32), w_t.astype(jnp.float32),
                 precision=lax.Precision.HIGHEST) + bias.astype(jnp.float32)
    h = x.shape[-1]
    return (x_norm * ss[..., :h] + ss[..., h:]).astype(x.dtype)


if __name__ == "__main__":
    key = jax.random.PRNGKey(0)
    eps = 1e-12

    # ---- Test 1: H=32 (< 128) -> lane-packed kernel path. ----
    batch, seq = 2, 8
    hidden, cond_size = 32, 8
    k1, k2, k3, k4, key = jax.random.split(key, 5)
    x = jax.random.normal(k1, (batch, seq, hidden), jnp.float32)
    c = jax.random.normal(k2, (batch, seq, cond_size), jnp.float32)

    # (a) module default init: weight = 0, bias = [1]*H ++ [0]*H.
    w_t0 = jnp.zeros((cond_size, 2 * hidden), jnp.float32)
    b0 = jnp.concatenate([jnp.ones((hidden,), jnp.float32),
                          jnp.zeros((hidden,), jnp.float32)])
    out = jax.block_until_ready(adaptive_layer_norm(x, c, w_t0, b0, eps=eps))
    ref = adaptive_layer_norm_ref(x, c, w_t0, b0, eps=eps)
    assert out.shape == x.shape
    assert jnp.allclose(out, ref, atol=3e-5, rtol=3e-5), "mismatch (packed, default init)"

    # (b) random projector weights (exercises the conditioning matmul).
    w_t1 = jax.random.normal(k3, (cond_size, 2 * hidden), jnp.float32) * 0.5
    b1 = jax.random.normal(k4, (2 * hidden,), jnp.float32) * 0.5
    out = jax.block_until_ready(adaptive_layer_norm(x, c, w_t1, b1, eps=eps))
    ref = adaptive_layer_norm_ref(x, c, w_t1, b1, eps=eps)
    assert jnp.allclose(out, ref, atol=3e-5, rtol=3e-5), "mismatch (packed, random init)"

    # ---- Test 2: H=128 -> plain row-tiled kernel path. ----
    hidden2, cond2 = 128, 16
    k5, k6, k7, k8, key = jax.random.split(key, 5)
    x2 = jax.random.normal(k5, (batch, seq, hidden2), jnp.float32)
    c2 = jax.random.normal(k6, (batch, seq, cond2), jnp.float32)
    w_t2 = jax.random.normal(k7, (cond2, 2 * hidden2), jnp.float32) * 0.5
    b2 = jax.random.normal(k8, (2 * hidden2,), jnp.float32) * 0.5
    out2 = jax.block_until_ready(adaptive_layer_norm(x2, c2, w_t2, b2, eps=eps))
    ref2 = adaptive_layer_norm_ref(x2, c2, w_t2, b2, eps=eps)
    assert out2.shape == x2.shape
    assert jnp.allclose(out2, ref2, atol=3e-5, rtol=3e-5), "mismatch (rows path)"

    # ---- Test 3: ragged row counts (exercise cdiv-grid boundary masking). ----
    k9, k10, k11, k12 = jax.random.split(key, 4)
    x3 = jax.random.normal(k9, (1, 10, hidden2), jnp.float32)        # rows path
    c3 = jax.random.normal(k10, (1, 10, cond2), jnp.float32)
    out3 = jax.block_until_ready(adaptive_layer_norm(x3, c3, w_t2, b2, eps=eps))
    ref3 = adaptive_layer_norm_ref(x3, c3, w_t2, b2, eps=eps)
    assert jnp.allclose(out3, ref3, atol=3e-5, rtol=3e-5), "mismatch (rows ragged)"

    x4 = jax.random.normal(k11, (1, 10, hidden), jnp.float32)         # packed path
    c4 = jax.random.normal(k12, (1, 10, cond_size), jnp.float32)
    out4 = jax.block_until_ready(adaptive_layer_norm(x4, c4, w_t1, b1, eps=eps))
    ref4 = adaptive_layer_norm_ref(x4, c4, w_t1, b1, eps=eps)
    assert jnp.allclose(out4, ref4, atol=3e-5, rtol=3e-5), "mismatch (packed ragged)"

    print("KERNEL_OK")
</pallas_src>

<mosaic_0001>
module attributes {stable_mosaic.version = 11 : i64} {
  func.func @_adaln_packed_kernel(%arg0: i32, %arg1: memref<8x128xf32, #tpu.memory_space<vmem>>, %arg2: memref<8x32xf32, #tpu.memory_space<vmem>>, %arg3: memref<128x128xf32, #tpu.memory_space<vmem>>, %arg4: memref<32x128xf32, #tpu.memory_space<vmem>>, %arg5: memref<32x128xf32, #tpu.memory_space<vmem>>, %arg6: memref<1x128xf32, #tpu.memory_space<vmem>>, %arg7: memref<1x128xf32, #tpu.memory_space<vmem>>, %arg8: memref<8x128xf32, #tpu.memory_space<vmem>>) attributes {dimension_semantics = [#tpu.dimension_semantics<parallel>], iteration_bounds = array<i64: 1>, scalar_prefetch = 0 : i64, scratch_operands = 0 : i64, tpu.core_type = #tpu.core_type<tc>, window_params = [{transform_indices = @transform_0, window_bounds = array<i64: 8, 128>}, {transform_indices = @transform_1, window_bounds = array<i64: 8, 32>}, {pipeline_mode = #tpu.pipeline_mode<synchronous>, transform_indices = @transform_2, window_bounds = array<i64: 128, 128>}, {pipeline_mode = #tpu.pipeline_mode<synchronous>, transform_indices = @transform_3, window_bounds = array<i64: 32, 128>}, {pipeline_mode = #tpu.pipeline_mode<synchronous>, transform_indices = @transform_4, window_bounds = array<i64: 32, 128>}, {pipeline_mode = #tpu.pipeline_mode<synchronous>, transform_indices = @transform_5, window_bounds = array<i64: 1, 128>}, {pipeline_mode = #tpu.pipeline_mode<synchronous>, transform_indices = @transform_6, window_bounds = array<i64: 1, 128>}, {transform_indices = @transform_7, window_bounds = array<i64: 8, 128>}]} {
    %c0 = arith.constant 0 : index
    %c0_0 = arith.constant 0 : index
    %0 = vector.load %arg1[%c0, %c0_0] : memref<8x128xf32, #tpu.memory_space<vmem>>, vector<8x128xf32>
    %c0_1 = arith.constant 0 : index
    %c0_2 = arith.constant 0 : index
    %1 = vector.load %arg2[%c0_1, %c0_2] : memref<8x32xf32, #tpu.memory_space<vmem>>, vector<8x32xf32>
    %c0_3 = arith.constant 0 : index
    %c0_4 = arith.constant 0 : index
    %2 = vector.load %arg3[%c0_3, %c0_4] : memref<128x128xf32, #tpu.memory_space<vmem>>, vector<128x128xf32>
    %cst = arith.constant dense<0.000000e+00> : vector<8x128xf32>
    %3 = tpu.matmul %0, %2, %cst {dimension_numbers = #tpu.dot_dimension_numbers<[1], [0], [0], [1], [0, 0, 1, 1], [], []>, precision = #tpu.contract_precision<fp32>} : vector<8x128xf32>, vector<128x128xf32>, vector<8x128xf32> -> vector<8x128xf32>
    %4 = arith.subf %0, %3 : vector<8x128xf32>
    %5 = arith.mulf %4, %4 : vector<8x128xf32>
    %cst_5 = arith.constant dense<0.000000e+00> : vector<8x128xf32>
    %6 = tpu.matmul %5, %2, %cst_5 {dimension_numbers = #tpu.dot_dimension_numbers<[1], [0], [0], [1], [0, 0, 1, 1], [], []>, precision = #tpu.contract_precision<fp32>} : vector<8x128xf32>, vector<128x128xf32>, vector<8x128xf32> -> vector<8x128xf32>
    %cst_6 = arith.constant 9.99999996E-13 : f32
    %7 = vector.broadcast %cst_6 : f32 to vector<8x128xf32>
    %8 = arith.addf %6, %7 : vector<8x128xf32>
    %9 = math.rsqrt %8 : vector<8x128xf32>
    %c0_7 = arith.constant 0 : index
    %c0_8 = arith.constant 0 : index
    %10 = vector.load %arg4[%c0_7, %c0_8] : memref<32x128xf32, #tpu.memory_space<vmem>>, vector<32x128xf32>
    %cst_9 = arith.constant dense<0.000000e+00> : vector<8x128xf32>
    %11 = tpu.matmul %1, %10, %cst_9 {dimension_numbers = #tpu.dot_dimension_numbers<[1], [0], [0], [1], [0, 0, 1, 1], [], []>, precision = #tpu.contract_precision<fp32>} : vector<8x32xf32>, vector<32x128xf32>, vector<8x128xf32> -> vector<8x128xf32>
    %c0_10 = arith.constant 0 : index
    %c0_11 = arith.constant 0 : index
    %12 = vector.load %arg6[%c0_10, %c0_11] : memref<1x128xf32, #tpu.memory_space<vmem>>, vector<1x128xf32>
    %13 = vector.broadcast %12 : vector<1x128xf32> to vector<8x128xf32>
    %14 = arith.addf %11, %13 : vector<8x128xf32>
    %c0_12 = arith.constant 0 : index
    %c0_13 = arith.constant 0 : index
    %15 = vector.load %arg5[%c0_12, %c0_13] : memref<32x128xf32, #tpu.memory_space<vmem>>, vector<32x128xf32>
    %cst_14 = arith.constant dense<0.000000e+00> : vector<8x128xf32>
    %16 = tpu.matmul %1, %15, %cst_14 {dimension_numbers = #tpu.dot_dimension_numbers<[1], [0], [0], [1], [0, 0, 1, 1], [], []>, precision = #tpu.contract_precision<fp32>} : vector<8x32xf32>, vector<32x128xf32>, vector<8x128xf32> -> vector<8x128xf32>
    %c0_15 = arith.constant 0 : index
    %c0_16 = arith.constant 0 : index
    %17 = vector.load %arg7[%c0_15, %c0_16] : memref<1x128xf32, #tpu.memory_space<vmem>>, vector<1x128xf32>
    %18 = vector.broadcast %17 : vector<1x128xf32> to vector<8x128xf32>
    %19 = arith.addf %16, %18 : vector<8x128xf32>
    %20 = arith.mulf %9, %14 : vector<8x128xf32>
    %21 = arith.mulf %4, %20 : vector<8x128xf32>
    %22 = arith.addf %21, %19 : vector<8x128xf32>
    %c0_17 = arith.constant 0 : index
    %c0_18 = arith.constant 0 : index
    %23 = vector.load %arg8[%c0_17, %c0_18] : memref<8x128xf32, #tpu.memory_space<vmem>>, vector<8x128xf32>
    tpu.vector_store %arg8[%c0_17, %c0_18], %22 {strides = array<i32>} : memref<8x128xf32, #tpu.memory_space<vmem>>, vector<8x128xf32>,
    return
  }
  func.func @transform_0(%arg0: i32) -> (i32, i32) {
    %c0_i32 = arith.constant 0 : i32
    %c0_i32_0 = arith.constant 0 : i32
    return %arg0, %c0_i32 : i32, i32
  }
  func.func @transform_1(%arg0: i32) -> (i32, i32) {
    %c0_i32 = arith.constant 0 : i32
    %c0_i32_0 = arith.constant 0 : i32
    return %arg0, %c0_i32 : i32, i32
  }
  func.func @transform_2(%arg0: i32) -> (i32, i32) {
    %c0_i32 = arith.constant 0 : i32
    %c0_i32_0 = arith.constant 0 : i32
    %c0_i32_1 = arith.constant 0 : i32
    return %c0_i32, %c0_i32_0 : i32, i32
  }
  func.func @transform_3(%arg0: i32) -> (i32, i32) {
    %c0_i32 = arith.constant 0 : i32
    %c0_i32_0 = arith.constant 0 : i32
    %c0_i32_1 = arith.constant 0 : i32
    return %c0_i32, %c0_i32_0 : i32, i32
  }
  func.func @transform_4(%arg0: i32) -> (i32, i32) {
    %c0_i32 = arith.constant 0 : i32
    %c0_i32_0 = arith.constant 0 : i32
    %c0_i32_1 = arith.constant 0 : i32
    return %c0_i32, %c0_i32_0 : i32, i32
  }
  func.func @transform_5(%arg0: i32) -> (i32, i32) {
    %c0_i32 = arith.constant 0 : i32
    %c0_i32_0 = arith.constant 0 : i32
    %c0_i32_1 = arith.constant 0 : i32
    return %c0_i32, %c0_i32_0 : i32, i32
  }
  func.func @transform_6(%arg0: i32) -> (i32, i32) {
    %c0_i32 = arith.constant 0 : i32
    %c0_i32_0 = arith.constant 0 : i32
    %c0_i32_1 = arith.constant 0 : i32
    return %c0_i32, %c0_i32_0 : i32, i32
  }
  func.func @transform_7(%arg0: i32) -> (i32, i32) {
    %c0_i32 = arith.constant 0 : i32
    %c0_i32_0 = arith.constant 0 : i32
    return %arg0, %c0_i32 : i32, i32
  }
}

</mosaic_0001>

<bundles_post_ra>
// kernel: tpu_custom_call.1
= control target key start
LH: loop header
LB: loop body
LE: loop exit
PB: predicated region body
PF: predicated region fallthrough
CT: control target
= control target key end

     0   :  { %12 = vsyncpa [#allocation3], 0  ;;  %s4423_s0 = inlined_call_operand.hbm [shape: f32[4,128], index: 0, kind: input, shape index: {}]   ;;  %s4424_s1 = inlined_call_operand.hbm [shape: f32[4,32], index: 1, kind: input, shape index: {}]   ;;  %s4425_s2 = inlined_call_operand.hbm [shape: f32[128,128], index: 2, kind: input, shape index: {}]   ;;  %s4426_s3 = inlined_call_operand.hbm [shape: f32[32,128], index: 3, kind: input, shape index: {}]   ;;  %s4427_s4 = inlined_call_operand.hbm [shape: f32[32,128], index: 4, kind: input, shape index: {}]   ;;  %s4428_s5 = inlined_call_operand.vmem [shape: f32[1,128], index: 5, kind: input, shape index: {}]   ;;  %s4429_s6 = inlined_call_operand.vmem [shape: f32[1,128], index: 6, kind: input, shape index: {}]   ;;  %s4430_s7 = inlined_call_operand.hbm [shape: f32[4,128], index: 7, kind: output, shape index: {}]  }
   0x1   :  { %13 = vsyncpa [#allocation6], 0 }
   0x2   :  { %14 = vsyncpa [#allocation9], 0 }
   0x3   :  { %15 = vsyncpa [#allocation4], 0 }
   0x4   :  { %20 = vsyncadd [#allocation3], 64  ;;  %s3782_s24 = smov [#allocation2]   ;;  %s3642_s28 = scalar_lea.hbm %s4423_s0, 64 }
   0x5   :  { %s21_s25 = sshll.u32 %s3782_s24, 4  ;;  %p3643_p0 = scmp.ne.s32.totalorder %s4423_s0, %s3642_s28  ;;  %s22_s25 = int_to_ptr.vmem [resolvable:$true] %s21_s25 }
   0x6   :  { %p3646_p1 = scmp.lt.u32.totalorder %s3642_s28, %s4423_s0 }
   0x8   :  { %p3648_p2 = pnand %p3646_p1, %p3643_p0 }
   0xa   :  { %3651 = shalt.err (!%p3648_p2)
}
   0xb   :  { %s3652_s10 = scalar_lea.vmem %s22_s25, 64  ;;  %s3656_s11 = scalar_lea.vmem %s22_s25, 128 }
   0xc   :  { %p3653_p3 = scmp.ne.s32.totalorder %s22_s25, %s3652_s10  ;;  %p3657_p4 = scmp.lt.s32.totalorder %s22_s25, %s22_s25 }
   0xd   :  { %p3658_p5 = scmp.lt.s32.totalorder %s3656_s11, %s3652_s10 }
   0xf   :  { %p3659_p6 = por %p3658_p5, %p3657_p4 }
  0x11   :  { %p3660_p7 = pnand %p3659_p6, %p3653_p3 }
  0x13   :  { %3663 = shalt.err (!%p3660_p7)
}
  0x14   :  { %s3783_s12 = smov 64   ;;  %s3784_s13 = smov 4  }
  0x15   :  { %27 = dma.hbm_to_vmem [thread:$0]  %s4423_s0, 64, %s22_s25, [#allocation3], %s3783_s12, %s3783_s12, %s3784_s13  }
  0x16   :  { %32 = vsyncadd [#allocation6], 64  ;;  %s3785_s16 = smov [#allocation5]   ;;  %s3664_s20 = scalar_lea.hbm %s4424_s1, 64 }
  0x17   :  { %s33_s17 = sshll.u32 %s3785_s16, 4  ;;  %p3665_p8 = scmp.ne.s32.totalorder %s4424_s1, %s3664_s20  ;;  %s34_s17 = int_to_ptr.vmem [resolvable:$true] %s33_s17 }
  0x18   :  { %p3668_p9 = scmp.lt.u32.totalorder %s3664_s20, %s4424_s1 }
  0x1a   :  { %p3670_p10 = pnand %p3668_p9, %p3665_p8 }
  0x1c   :  { %3673 = shalt.err (!%p3670_p10)
}
  0x1d   :  { %s3674_s26 = scalar_lea.vmem %s34_s17, 64  ;;  %s3678_s0 = scalar_lea.vmem %s34_s17, 128 }
  0x1e   :  { %p3675_p11 = scmp.ne.s32.totalorder %s34_s17, %s3674_s26  ;;  %p3679_p12 = scmp.lt.s32.totalorder %s34_s17, %s34_s17 }
  0x1f   :  { %p3680_p13 = scmp.lt.s32.totalorder %s3678_s0, %s3674_s26 }
  0x21   :  { %p3681_p0 = por %p3680_p13, %p3679_p12 }
  0x23   :  { %p3682_p1 = pnand %p3681_p0, %p3675_p11 }
  0x25   :  { %3685 = shalt.err (!%p3682_p1)
}
  0x26   :  { %39 = dma.hbm_to_vmem [thread:$0]  %s4424_s1, 64, %s34_s17, [#allocation6], %s3783_s12, %s3783_s12, %s3784_s13  }
  0x27   :  { %s3786_s28 = smov [#allocation8]   ;;  %s3787_s30 = smov [#allocation7]  }
  0x28   :  { %s57_s29 = sshll.u32 %s3786_s28, 4  ;;  %s45_s8 = sshll.u32 %s3787_s30, 4  ;;  %s58_s29 = int_to_ptr.vmem [resolvable:$true] %s57_s29  ;;  %s46_s8 = int_to_ptr.vmem [resolvable:$true] %s45_s8 }
  0x29   :  { %s3686_s11 = scalar_lea.hbm %s4426_s3, 512 }
  0x2a   :  { %p3687_p2 = scmp.ne.s32.totalorder %s4426_s3, %s3686_s11  ;;  %p3690_p3 = scmp.lt.u32.totalorder %s3686_s11, %s4426_s3 }
  0x2c   :  { %p3692_p4 = pnand %p3690_p3, %p3687_p2 }
  0x2e   :  { %3695 = shalt.err (!%p3692_p4)
}
  0x2f   :  { %s3696_s1 = scalar_lea.vmem %s58_s29, 512  ;;  %p3701_p6 = scmp.lt.s32.totalorder %s58_s29, %s58_s29 }
  0x30   :  { %p3697_p5 = scmp.ne.s32.totalorder %s58_s29, %s3696_s1  ;;  %p3702_p7 = scmp.lt.s32.totalorder %s3696_s1, %s3696_s1 }
  0x32   :  { %p3703_p8 = por %p3702_p7, %p3701_p6 }
  0x34   :  { %p3704_p9 = pnand %p3703_p8, %p3697_p5 }
  0x36   :  { %3707 = shalt.err (!%p3704_p9)
}
  0x37   :  { %s3788_s17 = smov 128   ;;  %s3789_s19 = smov 8  }
  0x38   :  { %63 = dma.hbm_to_vmem [thread:$0]  %s4426_s3, 512, %s58_s29, [#allocation9], %s3788_s17, %s3788_s17, %s3789_s19  }
  0x39   :  { %s3708_s24 = scalar_lea.hbm %s4425_s2, 2048 }
  0x3a   :  { %p3709_p10 = scmp.ne.s32.totalorder %s4425_s2, %s3708_s24  ;;  %p3712_p11 = scmp.lt.u32.totalorder %s3708_s24, %s4425_s2 }
  0x3c   :  { %p3714_p12 = pnand %p3712_p11, %p3709_p10 }
  0x3e   :  { %3717 = shalt.err (!%p3714_p12)
}
  0x3f   :  { %s3718_s28 = scalar_lea.vmem %s46_s8, 2048  ;;  %p3723_p0 = scmp.lt.s32.totalorder %s46_s8, %s46_s8 }
  0x40   :  { %p3719_p13 = scmp.ne.s32.totalorder %s46_s8, %s3718_s28  ;;  %p3724_p1 = scmp.lt.s32.totalorder %s3718_s28, %s3718_s28 }
  0x42   :  { %p3725_p2 = por %p3724_p1, %p3723_p0 }
  0x44   :  { %p3726_p3 = pnand %p3725_p2, %p3719_p13 }
  0x46   :  { %3729 = shalt.err (!%p3726_p3)
}
  0x47   :  { %51 = dma.hbm_to_vmem [thread:$0]  %s4425_s2, 2048, %s46_s8, [#allocation6], %s3788_s17, %s3788_s17, %s3789_s19  }
  0x48   :  { %s3790_s30 = smov [#allocation10]   ;;  %s3730_s14 = scalar_lea.hbm %s4427_s4, 512 }
  0x49   :  { %s69_s9 = sshll.u32 %s3790_s30, 4  ;;  %p3731_p4 = scmp.ne.s32.totalorder %s4427_s4, %s3730_s14  ;;  %s70_s9 = int_to_ptr.vmem [resolvable:$true] %s69_s9 }
  0x4a   :  { %p3734_p5 = scmp.lt.u32.totalorder %s3730_s14, %s4427_s4 }
  0x4c   :  { %p3736_p6 = pnand %p3734_p5, %p3731_p4 }
  0x4e   :  { %3739 = shalt.err (!%p3736_p6)
}
  0x4f   :  { %s3740_s20 = scalar_lea.vmem %s70_s9, 512  ;;  %p3745_p8 = scmp.lt.s32.totalorder %s70_s9, %s70_s9 }
  0x50   :  { %p3741_p7 = scmp.ne.s32.totalorder %s70_s9, %s3740_s20  ;;  %p3746_p9 = scmp.lt.s32.totalorder %s3740_s20, %s3740_s20 }
  0x52   :  { %p3747_p10 = por %p3746_p9, %p3745_p8 }
  0x54   :  { %p3748_p11 = pnand %p3747_p10, %p3741_p7 }
  0x56   :  { %3751 = shalt.err (!%p3748_p11)
}
  0x57   :  { %75 = dma.hbm_to_vmem [thread:$0]  %s4427_s4, 512, %s70_s9, [#allocation9], %s3788_s17, %s3788_s17, %s3789_s19  }
  0x58   :  { %3774 = dma.done.wait [#allocation3], 128  }
  0x59   :  { %3775 = vsyncadd [#allocation3], 4294967168 }
  0x5a   :  { %3776 = dma.done.wait [#allocation6], 2176  }
  0x5b   :  { %3777 = vsyncadd [#allocation6], 4294965120 }
  0x5c   :  { %3778 = dma.done.wait [#allocation9], 1024  }
  0x5d   :  { %3779 = vsyncadd [#allocation9], 4294966272  ;;  %v3791_v0 = vmov 0.0|0.0   ;;  %vm3792_vm0 = vmmov 0   ;;  %v3793_v1 = vmov 0.0   ;;  %v97_v2 = vld [vmem:[#allocation7] sm:$0xff] }
  0x5e   :  { %3235 = vmatprep.subr.bf16.mxu0 %v3791_v0  ;;  %2715 = vmatprep.mubr.msk.f32.mxu0 %vm3792_vm0, %v3793_v1  ;;  %v98_v3 = vld [vmem:[#allocation7 + $0x8] sm:$0xff]  ;;  %v99_v4 = vld [vmem:[#allocation7 + $0x10] sm:$0xff]  ;;  %v114_v5 = vand.u32 4294901760, %v97_v2  ;;  %v100_v7 = vld [vmem:[#allocation7 + $0x18] sm:$0xff]  ;;  %vm1409_vm1 = vcmask 261120  }
  0x5f   :  { %3379 = vmatprep.subr.bf16.mxu1 %v3791_v0  ;;  %2925 = vmatprep.mubr.msk.f32.mxu1 %vm3792_vm0, %v3793_v1  ;;  %v117_v6 = vand.u32 4294901760, %v98_v3  ;;  %v120_v8 = vand.u32 4294901760, %v99_v4  ;;  %v123_v9 = vand.u32 4294901760, %v100_v7  ;;  %v101_v10 = vld [vmem:[#allocation7 + $0x20] sm:$0xff]  ;;  %v102_v11 = vld [vmem:[#allocation7 + $0x28] sm:$0xff]  ;;  %v103_v16 = vld [vmem:[#allocation7 + $0x30] sm:$0xff] }
  0x60   :  { %v126_v14 = vand.u32 4294901760, %v101_v10  ;;  %v129_v15 = vand.u32 4294901760, %v102_v11  ;;  %v104_v17 = vld [vmem:[#allocation7 + $0x38] sm:$0xff]  ;;  %v132_v19 = vand.u32 4294901760, %v103_v16  ;;  %v105_v21 = vld [vmem:[#allocation7 + $0x40] sm:$0xff]  ;;  %v3927_v22 = vld [vmem:[#allocation2] sm:$0xff]  ;;  %v3938_v34 = vsub.f32 %v97_v2, %v114_v5 }
  0x61   :  { %v3916_v12 = vpack.c.bf16 %v117_v6, %v114_v5  ;;  %v3919_v13 = vpack.c.bf16 %v123_v9, %v120_v8  ;;  %v135_v20 = vand.u32 4294901760, %v104_v17  ;;  %v106_v23 = vld [vmem:[#allocation7 + $0x48] sm:$0xff]  ;;  %v107_v24 = vld [vmem:[#allocation7 + $0x50] sm:$0xff]  ;;  %v108_v25 = vld [vmem:[#allocation7 + $0x58] sm:$0xff]  ;;  %v138_v27 = vand.u32 4294901760, %v105_v21 }
  0x62   :  { %v3925_v18 = vpack.c.bf16 %v129_v15, %v126_v14  ;;  %v109_v26 = vld [vmem:[#allocation7 + $0x60] sm:$0xff]  ;;  %v110_v28 = vld [vmem:[#allocation7 + $0x68] sm:$0xff]  ;;  %v111_v29 = vld [vmem:[#allocation7 + $0x70] sm:$0xff]  ;;  %v3933_v31 = vand.u32 4294901760, %v3927_v22  ;;  %v141_v33 = vand.u32 4294901760, %v106_v23  ;;  %v3940_v35 = vsub.f32 %v98_v3, %v117_v6 }
  0x63   :  { %3237 = vmatpush3.bf16.msra.mxu0 %v3916_v12  ;;  %3381 = vmatpush3.bf16.msra.mxu1 %v3916_v12  ;;  %v112_v30 = vld [vmem:[#allocation7 + $0x78] sm:$0xff]  ;;  %v3936_v32 = vpack.c.bf16 %v135_v20, %v132_v19  ;;  %v144_v36 = vand.u32 4294901760, %v107_v24  ;;  %v147_v37 = vand.u32 4294901760, %v108_v25  ;;  %v150_v38 = vand.u32 4294901760, %v109_v26 }
  0x64   :  { %3238 = vmatprep.subr.bf16.mxu0 %v3791_v0  ;;  %3382 = vmatprep.subr.bf16.mxu1 %v3791_v0  ;;  %v153_v39 = vand.u32 4294901760, %v110_v28  ;;  %v156_v40 = vand.u32 4294901760, %v111_v29  ;;  %v159_v41 = vand.u32 4294901760, %v112_v30  ;;  %v3947_v42 = vsub.f32 %v3927_v22, %v3933_v31 }
  0x65   :  { %v3949_v43 = vsub.f32 %v99_v4, %v120_v8  ;;  %v3952_v44 = vpack.c.bf16 %v141_v33, %v138_v27  ;;  %v207_v45 = vand.u32 4294901760, %v3938_v34  ;;  %v214_v46 = vand.u32 4294901760, %v3940_v35 }
  0x66   :  { %v3956_v47 = vsub.f32 %v100_v7, %v123_v9  ;;  %v3960_v48 = vsub.f32 %v101_v10, %v126_v14  ;;  %v3963_v49 = vpack.c.bf16 %v147_v37, %v144_v36  ;;  %v3965_v50 = vpack.c.bf16 %v153_v39, %v150_v38 }
  0x67   :  { %3240 = vmatpush3.bf16.msra.mxu0 %v3919_v13  ;;  %3384 = vmatpush3.bf16.msra.mxu1 %v3919_v13  ;;  %v3967_v51 = vpack.c.bf16 %v159_v41, %v156_v40  ;;  %v196_v52 = vand.u32 4294901760, %v3947_v42  ;;  %v221_v53 = vand.u32 4294901760, %v3949_v43  ;;  %v3971_v54 = vsub.f32 %v102_v11, %v129_v15 }
  0x68   :  { %3241 = vmatprep.subr.bf16.mxu0 %v3791_v0  ;;  %3385 = vmatprep.subr.bf16.mxu1 %v3791_v0  ;;  %v3973_v55 = vsub.f32 %v103_v16, %v132_v19  ;;  %v208_v56 = vsub.f32 %v3938_v34, %v207_v45  ;;  %v215_v57 = vsub.f32 %v3940_v35, %v214_v46  ;;  %v228_v58 = vand.u32 4294901760, %v3956_v47 }
  0x69   :  { %v3979_v59 = vsub.f32 %v104_v17, %v135_v20  ;;  %v235_v60 = vand.u32 4294901760, %v3960_v48  ;;  %v3984_v61 = vsub.f32 %v105_v21, %v138_v27  ;;  %v3986_v62 = vsub.f32 %v106_v23, %v141_v33 }
  0x6a   :  { %v3988_v63 = vsub.f32 %v107_v24, %v144_v36  ;;  %v3991_v2 = vsub.f32 %v108_v25, %v147_v37  ;;  %v3993_v3 = vsub.f32 %v109_v26, %v150_v38  ;;  %v3995_v4 = vsub.f32 %v110_v28, %v153_v39 }
  0x6b   :  { %3243 = vmatpush3.bf16.msra.mxu0 %v3925_v18  ;;  %3387 = vmatpush3.bf16.msra.mxu1 %v3925_v18  ;;  %v3997_v5 = vsub.f32 %v111_v29, %v156_v40  ;;  %v197_v6 = vsub.f32 %v3947_v42, %v196_v52  ;;  %v222_v7 = vsub.f32 %v3949_v43, %v221_v53  ;;  %v242_v8 = vand.u32 4294901760, %v3971_v54 }
  0x6c   :  { %3244 = vmatprep.subr.bf16.mxu0 %v3791_v0  ;;  %3388 = vmatprep.subr.bf16.mxu1 %v3791_v0  ;;  %v4004_v9 = vsub.f32 %v112_v30, %v159_v41  ;;  %v209_v10 = vand.u32 4294901760, %v208_v56  ;;  %v216_v11 = vand.u32 4294901760, %v215_v57  ;;  %v229_v14 = vsub.f32 %v3956_v47, %v228_v58 }
  0x6d   :  { %v249_v15 = vand.u32 4294901760, %v3973_v55  ;;  %v256_v16 = vand.u32 4294901760, %v3979_v59  ;;  %v263_v17 = vand.u32 4294901760, %v3984_v61  ;;  %v270_v19 = vand.u32 4294901760, %v3986_v62 }
  0x6e   :  { %v277_v20 = vand.u32 4294901760, %v3988_v63  ;;  %v284_v21 = vand.u32 4294901760, %v3991_v2  ;;  %v291_v23 = vand.u32 4294901760, %v3993_v3  ;;  %v298_v24 = vand.u32 4294901760, %v3995_v4 }
  0x6f   :  { %3246 = vmatpush3.bf16.msra.mxu0 %v3936_v32  ;;  %3390 = vmatpush3.bf16.msra.mxu1 %v3936_v32  ;;  %v305_v25 = vand.u32 4294901760, %v3997_v5  ;;  %v312_v26 = vand.u32 4294901760, %v4004_v9  ;;  %v4021_v27 = vpack.c.bf16 %v214_v46, %v207_v45  ;;  %v4023_v28 = vpack.c.bf16 %v228_v58, %v221_v53 }
  0x70   :  { %3247 = vmatprep.subr.bf16.mxu0 %v3791_v0  ;;  %3391 = vmatprep.subr.bf16.mxu1 %v3791_v0  ;;  %v4025_v29 = vpack.c.bf16 %v242_v8, %v235_v60  ;;  %v4028_v30 = vpack.c.bf16 %v256_v16, %v249_v15  ;;  %v4030_v33 = vpack.c.bf16 %v270_v19, %v263_v17  ;;  %v198_v39 = vand.u32 4294901760, %v197_v6 }
  0x71   :  { %v4032_v36 = vpack.c.bf16 %v284_v21, %v277_v20  ;;  %v4034_v37 = vpack.c.bf16 %v298_v24, %v291_v23  ;;  %v4037_v38 = vpack.c.bf16 %v312_v26, %v305_v25  ;;  %v236_v40 = vsub.f32 %v3960_v48, %v235_v60 }
  0x72   :  { %v4043_v41 = vpack.c.bf16 %v216_v11, %v209_v10  ;;  %v223_v45 = vand.u32 4294901760, %v222_v7  ;;  %v230_v46 = vand.u32 4294901760, %v229_v14  ;;  %v243_v53 = vsub.f32 %v3971_v54, %v242_v8 }
  0x73   :  { %3249 = vmatpush3.bf16.msra.mxu0 %v3952_v44  ;;  %3393 = vmatpush3.bf16.msra.mxu1 %v3952_v44  ;;  %v250_v56 = vsub.f32 %v3973_v55, %v249_v15  ;;  %v237_v58 = vand.u32 4294901760, %v236_v40  ;;  %v257_v6 = vsub.f32 %v3979_v59, %v256_v16  ;;  %v264_v11 = vsub.f32 %v3984_v61, %v263_v17 }
  0x74   :  { %3250 = vmatprep.subr.bf16.mxu0 %v3791_v0  ;;  %3394 = vmatprep.subr.bf16.mxu1 %v3791_v0  ;;  %v4051_v57 = vpack.c.bf16 %v230_v46, %v223_v45  ;;  %v244_v60 = vand.u32 4294901760, %v243_v53  ;;  %v271_v14 = vsub.f32 %v3986_v62, %v270_v19  ;;  %v278_v15 = vsub.f32 %v3988_v63, %v277_v20 }
  0x75   :  { %v251_v7 = vand.u32 4294901760, %v250_v56  ;;  %v258_v10 = vand.u32 4294901760, %v257_v6  ;;  %v285_v45 = vsub.f32 %v3991_v2, %v284_v21  ;;  %v292_v46 = vsub.f32 %v3993_v3, %v291_v23 }
  0x76   :  { %v4058_v8 = vpack.c.bf16 %v244_v60, %v237_v58  ;;  %v272_v40 = vand.u32 4294901760, %v271_v14  ;;  %v279_v19 = vand.u32 4294901760, %v278_v15  ;;  %v299_v20 = vsub.f32 %v3995_v4, %v298_v24  ;;  %v1401_v14 = vld [vmem:[#allocation8 + $0x18] sm:$0xff] }
  0x77   :  { %3252 = vmatpush3.bf16.msra.mxu0 %v3963_v49  ;;  %3396 = vmatpush3.bf16.msra.mxu1 %v3963_v49  ;;  %v4065_v16 = vpack.c.bf16 %v258_v10, %v251_v7  ;;  %v286_v53 = vand.u32 4294901760, %v285_v45  ;;  %v306_v56 = vsub.f32 %v3997_v5, %v305_v25  ;;  %v293_v21 = vand.u32 4294901760, %v292_v46 }
  0x78   :  { %3253 = vmatprep.subr.bf16.mxu0 %v3791_v0  ;;  %3397 = vmatprep.subr.bf16.mxu1 %v3791_v0  ;;  %v300_v60 = vand.u32 4294901760, %v299_v20  ;;  %v313_v23 = vsub.f32 %v4004_v9, %v312_v26  ;;  %v4092_v26 = vpack.c.bf16 %v3940_v35, %v3938_v34  ;;  %v4099_v10 = vpack.c.bf16 %v3956_v47, %v3949_v43 }
  0x79   :  { %v4077_v58 = vpack.c.bf16 %v286_v53, %v279_v19  ;;  %v307_v7 = vand.u32 4294901760, %v306_v56  ;;  %v4107_v34 = vpack.c.bf16 %v3971_v54, %v3960_v48  ;;  %v4113_v35 = vpack.c.bf16 %v3979_v59, %v3973_v55  ;;  %v96_v55 = vld [vmem:[#allocation5] sm:$0xff] }
  0x7a   :  { %v4082_v6 = vpack.c.bf16 %v300_v60, %v293_v21  ;;  %v314_v24 = vand.u32 4294901760, %v313_v23  ;;  %v4119_v43 = vpack.c.bf16 %v3986_v62, %v3984_v61  ;;  %v4125_v47 = vpack.c.bf16 %v3991_v2, %v3988_v63 }
  0x7b   :  { %3255 = vmatpush3.bf16.msra.mxu0 %v3965_v50  ;;  %3399 = vmatpush3.bf16.msra.mxu1 %v3965_v50  ;;  %v4131_v48 = vpack.c.bf16 %v3995_v4, %v3993_v3  ;;  %v4137_v54 = vpack.c.bf16 %v4004_v9, %v3997_v5  ;;  %v1411_v62 = vsel %vm1409_vm1, %v96_v55, 0 }
  0x7c   :  { %3256 = vmatprep.subr.bf16.mxu0 %v3791_v0  ;;  %3400 = vmatprep.subr.bf16.mxu1 %v3791_v0  ;;  %v4086_v25 = vpack.c.bf16 %v314_v24, %v307_v7  ;;  %v4203_v2 = vand.u32 4294901760, %v1411_v62 }
  0x7e   :  { %v4215_v15 = vsub.f32 %v1411_v62, %v4203_v2 }
  0x7f   :  { %3258 = vmatpush3.bf16.msra.mxu0 %v3967_v51  ;;  %3402 = vmatpush3.bf16.msra.mxu1 %v3967_v51 }
  0x80   :  { %3259 = vmatprep.subr.bf16.mxu0 %v3791_v0  ;;  %3403 = vmatprep.subr.bf16.mxu1 %v3791_v0  ;;  %v4223_v46 = vand.u32 4294901760, %v4215_v15 }
  0x82   :  { %2716 = vmatmul.mubr.f32.vlgmr.msra.gmra.mrb[0].mxu0 %v198_v39  ;;  %v265_v39 = vand.u32 4294901760, %v264_v11  ;;  %v1400_v11 = vld [vmem:[#allocation8 + $0x10] sm:$0xff]  ;;  %v1485_v60 = vsub.f32 %v4215_v15, %v4223_v46 }
  0x83   :  { %3261 = vmatpush3.bf16.msra.mxu0 %v4043_v41  ;;  %2750 = vmatprep.mubr.msk.f32.mxu0 %vm3792_vm0, %v3793_v1 }
  0x84   :  { %3262 = vmatprep.subr.bf16.mxu0 %v3791_v0  ;;  %v4071_v17 = vpack.c.bf16 %v272_v40, %v265_v39  ;;  %v1420_v40 = vand.u32 4294901760, %v1400_v11  ;;  %v4238_v55 = vand.u32 4294901760, %v1485_v60 }
  0x86   :  { %v1508_v56 = vsub.f32 %v1400_v11, %v1420_v40 }
  0x87   :  { %3264 = vmatpush3.bf16.msra.mxu0 %v4051_v57 }
  0x88   :  { %3265 = vmatprep.subr.bf16.mxu0 %v3791_v0 }
  0x8b   :  { %3267 = vmatpush3.bf16.msra.mxu0 %v4058_v8 }
  0x8c   :  { %3268 = vmatprep.subr.bf16.mxu0 %v3791_v0 }
  0x8f   :  { %3270 = vmatpush3.bf16.msra.mxu0 %v4065_v16 }
  0x90   :  { %3271 = vmatprep.subr.bf16.mxu0 %v3791_v0 }
  0x93   :  { %3273 = vmatpush3.bf16.msra.mxu0 %v4071_v17 }
  0x94   :  { %3274 = vmatprep.subr.bf16.mxu0 %v3791_v0 }
  0x97   :  { %3276 = vmatpush3.bf16.msra.mxu0 %v4077_v58 }
  0x98   :  { %3277 = vmatprep.subr.bf16.mxu0 %v3791_v0 }
  0x9b   :  { %3279 = vmatpush3.bf16.msra.mxu0 %v4082_v6 }
  0x9c   :  { %3280 = vmatprep.subr.bf16.mxu0 %v3791_v0 }
  0x9f   :  { %3282 = vmatpush3.bf16.msra.mxu0 %v4086_v25 }
  0xa0   :  { %3283 = vmatprep.subr.bf16.mxu0 %v3791_v0 }
  0xa2   :  { %2751 = vmatmul.mubr.f32.vlgmr.msra.gmra.mrb[0].mxu0 %v3933_v31 }
  0xa3   :  { %3285 = vmatpush3.bf16.msra.mxu0 %v4092_v26  ;;  %2785 = vmatprep.mubr.msk.f32.mxu0 %vm3792_vm0, %v3793_v1 }
  0xa4   :  { %3286 = vmatprep.subr.bf16.mxu0 %v3791_v0 }
  0xa7   :  { %3288 = vmatpush3.bf16.msra.mxu0 %v4099_v10 }
  0xa8   :  { %3289 = vmatprep.subr.bf16.mxu0 %v3791_v0 }
  0xab   :  { %3291 = vmatpush3.bf16.msra.mxu0 %v4107_v34 }
  0xac   :  { %3292 = vmatprep.subr.bf16.mxu0 %v3791_v0 }
  0xaf   :  { %3294 = vmatpush3.bf16.msra.mxu0 %v4113_v35 }
  0xb0   :  { %3295 = vmatprep.subr.bf16.mxu0 %v3791_v0 }
  0xb3   :  { %3297 = vmatpush3.bf16.msra.mxu0 %v4119_v43 }
  0xb4   :  { %3298 = vmatprep.subr.bf16.mxu0 %v3791_v0 }
  0xb7   :  { %3300 = vmatpush3.bf16.msra.mxu0 %v4125_v47 }
  0xb8   :  { %3301 = vmatprep.subr.bf16.mxu0 %v3791_v0 }
  0xbb   :  { %3303 = vmatpush3.bf16.msra.mxu0 %v4131_v48 }
  0xbc   :  { %3304 = vmatprep.subr.bf16.mxu0 %v3791_v0 }
  0xbf   :  { %3306 = vmatpush3.bf16.msra.mxu0 %v4137_v54 }
  0xc0   :  { %3307 = vmatprep.subr.bf16.mxu0 %v3791_v0 }
  0xc2   :  { %2786 = vmatmul.mubr.f32.vlgmr.msra.gmra.mrb[0].mxu0 %v3947_v42  ;;  %v1398_v42 = vld [vmem:[#allocation8] sm:$0xff] }
  0xc3   :  { %3309 = vmatpush3.bf16.msra.mxu0 %v3916_v12  ;;  %2820 = vmatprep.mubr.msk.f32.mxu0 %vm3792_vm0, %v3793_v1  ;;  %v1414_v59 = vand.u32 4294901760, %v1398_v42 }
  0xc4   :  { %3310 = vmatprep.subr.bf16.mxu0 %v3791_v0 }
  0xc7   :  { %3312 = vmatpush3.bf16.msra.mxu0 %v3919_v13 }
  0xc8   :  { %3313 = vmatprep.subr.bf16.mxu0 %v3791_v0 }
  0xcb   :  { %3315 = vmatpush3.bf16.msra.mxu0 %v3925_v18 }
  0xcc   :  { %3316 = vmatprep.subr.bf16.mxu0 %v3791_v0 }
  0xcf   :  { %3318 = vmatpush3.bf16.msra.mxu0 %v3936_v32 }
  0xd0   :  { %3319 = vmatprep.subr.bf16.mxu0 %v3791_v0 }
  0xd3   :  { %3321 = vmatpush3.bf16.msra.mxu0 %v3952_v44 }
  0xd4   :  { %3322 = vmatprep.subr.bf16.mxu0 %v3791_v0 }
  0xd7   :  { %3324 = vmatpush3.bf16.msra.mxu0 %v3963_v49 }
  0xd8   :  { %3325 = vmatprep.subr.bf16.mxu0 %v3791_v0 }
  0xdb   :  { %3327 = vmatpush3.bf16.msra.mxu0 %v3965_v50 }
  0xdc   :  { %3328 = vmatprep.subr.bf16.mxu0 %v3791_v0 }
  0xdf   :  { %3330 = vmatpush3.bf16.msra.mxu0 %v3967_v51 }
  0xe0   :  { %3331 = vmatprep.subr.bf16.mxu0 %v3791_v0 }
  0xe2   :  { %2821 = vmatmul.mubr.f32.vlgmr.msra.gmra.mrb[0].mxu0 %v196_v52  ;;  %v1399_v52 = vld [vmem:[#allocation8 + $0x8] sm:$0xff] }
  0xe3   :  { %3333 = vmatpush3.bf16.msra.mxu0 %v4021_v27  ;;  %2855 = vmatprep.mubr.msk.f32.mxu0 %vm3792_vm0, %v3793_v1  ;;  %v1417_v61 = vand.u32 4294901760, %v1399_v52 }
  0xe4   :  { %3334 = vmatprep.subr.bf16.mxu0 %v3791_v0 }
  0xe5   :  { %v4208_v5 = vpack.c.bf16 %v1417_v61, %v1414_v59  ;;  %v4212_v9 = vsub.f32 %v1399_v52, %v1417_v61 }
  0xe7   :  { %3336 = vmatpush3.bf16.msra.mxu0 %v4023_v28  ;;  %v1502_v19 = vand.u32 4294901760, %v4212_v9 }
  0xe8   :  { %3337 = vmatprep.subr.bf16.mxu0 %v3791_v0 }
  0xe9   :  { %v1503_v7 = vsub.f32 %v4212_v9, %v1502_v19 }
  0xeb   :  { %3339 = vmatpush3.bf16.msra.mxu0 %v4025_v29  ;;  %v1504_v61 = vand.u32 4294901760, %v1503_v7 }
  0xec   :  { %3340 = vmatprep.subr.bf16.mxu0 %v3791_v0 }
  0xef   :  { %3342 = vmatpush3.bf16.msra.mxu0 %v4028_v30 }
  0xf0   :  { %3343 = vmatprep.subr.bf16.mxu0 %v3791_v0 }
  0xf3   :  { %3345 = vmatpush3.bf16.msra.mxu0 %v4030_v33 }
  0xf4   :  { %3346 = vmatprep.subr.bf16.mxu0 %v3791_v0 }
  0xf7   :  { %3348 = vmatpush3.bf16.msra.mxu0 %v4032_v36 }
  0xf8   :  { %3349 = vmatprep.subr.bf16.mxu0 %v3791_v0 }
  0xfb   :  { %3351 = vmatpush3.bf16.msra.mxu0 %v4034_v37 }
  0xfc   :  { %3352 = vmatprep.subr.bf16.mxu0 %v3791_v0 }
  0xff   :  { %3354 = vmatpush3.bf16.msra.mxu0 %v4037_v38 }
 0x100   :  { %3355 = vmatprep.subr.bf16.mxu0 %v3791_v0 }
 0x102   :  { %2856 = vmatmul.mubr.f32.vlgmr.msra.gmra.mrb[0].mxu0 %v3933_v31 }
 0x103   :  { %3357 = vmatpush3.bf16.msra.mxu0 %v3916_v12  ;;  %2890 = vmatprep.mubr.msk.f32.mxu0 %vm3792_vm0, %v3793_v1 }
 0x104   :  { %3358 = vmatprep.subr.bf16.mxu0 %v3791_v0 }
 0x107   :  { %3360 = vmatpush3.bf16.msra.mxu0 %v3919_v13 }
 0x108   :  { %3361 = vmatprep.subr.bf16.mxu0 %v3791_v0 }
 0x10b   :  { %3363 = vmatpush3.bf16.msra.mxu0 %v3925_v18 }
 0x10c   :  { %3364 = vmatprep.subr.bf16.mxu0 %v3791_v0 }
 0x10f   :  { %3366 = vmatpush3.bf16.msra.mxu0 %v3936_v32 }
 0x110   :  { %3367 = vmatprep.subr.bf16.mxu0 %v3791_v0 }
 0x113   :  { %3369 = vmatpush3.bf16.msra.mxu0 %v3952_v44 }
 0x114   :  { %3370 = vmatprep.subr.bf16.mxu0 %v3791_v0 }
 0x117   :  { %3372 = vmatpush3.bf16.msra.mxu0 %v3963_v49 }
 0x118   :  { %3373 = vmatprep.subr.bf16.mxu0 %v3791_v0 }
 0x11b   :  { %3375 = vmatpush3.bf16.msra.mxu0 %v3965_v50 }
 0x11c   :  { %3376 = vmatprep.subr.bf16.mxu0 %v3791_v0 }
 0x11f   :  { %3378 = vmatpush3.bf16.msra.mxu0 %v3967_v51 }
 0x120   :  { %3523 = vmatprep.subr.bf16.mxu0 %v3791_v0 }
 0x122   :  { %2891 = vmatmul.mubr.f32.vlgmr.msra.gmra.mrb[0].mxu0 %v3933_v31  ;;  %v4210_v31 = vsub.f32 %v1398_v42, %v1414_v59  ;;  %v1509_v42 = vand.u32 4294901760, %v1508_v56 }
 0x123   :  { %3111 = vmatprep.mubr.msk.f32.mxu0 %vm3792_vm0, %v3793_v1  ;;  %3525 = vmatpush3.bf16.msra.mxu0 %v4208_v5 }
 0x124   :  { %v1495_v45 = vand.u32 4294901760, %v4210_v31  ;;  %3526 = vmatprep.subr.bf16.mxu0 %v3791_v0 }
 0x126   :  { %v1496_v23 = vsub.f32 %v4210_v31, %v1495_v45 }
 0x128   :  { %v1497_v59 = vand.u32 4294901760, %v1496_v23  ;;  %v3536_v23 = vpack.c.bf16 %v4212_v9, %v4210_v31 }
 0x12a   :  { %v3530_v11 = vpack.c.bf16 %v1504_v61, %v1497_v59 }
 0x1f5   :  { %v750_v63 = vpop.f32.mrb[0].mxu0 }
 0x1f6   :  { %v4206_v3 = vsub.f32 %v3927_v22, %v750_v63  ;;  %v2892_v4 = vpop.f32.mrb[1].mxu0  ;;  %v1423_v22 = vand.u32 4294901760, %v1401_v14  ;;  %v1510_v63 = vsub.f32 %v1508_v56, %v1509_v42 }
 0x1f8   :  { %v755_v39 = vmul.f32 %v4206_v3, %v4206_v3  ;;  %v4228_v20 = vpack.c.bf16 %v1423_v22, %v1420_v40  ;;  %v1515_v21 = vsub.f32 %v1401_v14, %v1423_v22 }
 0x1fa   :  { %v4226_v53 = vand.u32 4294901760, %v755_v39  ;;  %3528 = vmatpush3.bf16.msra.mxu0 %v4228_v20  ;;  %v1516_v52 = vand.u32 4294901760, %v1515_v21  ;;  %v3539_v7 = vpack.c.bf16 %v1515_v21, %v1508_v56 }
 0x1fb   :  { %3529 = vmatprep.subr.bf16.mxu0 %v3791_v0 }
 0x1fc   :  { %v4235_v24 = vsub.f32 %v755_v39, %v4226_v53  ;;  %v1517_v4 = vsub.f32 %v1515_v21, %v1516_v52  ;;  %v1511_v39 = vand.u32 4294901760, %v1510_v63 }
 0x1fd   :  { %3112 = vmatmul.mubr.f32.vlgmr.msra.gmra.mrb[2].mxu0 %v4238_v55 }
 0x1fe   :  { %v839_v62 = vand.u32 4294901760, %v4235_v24  ;;  %v1518_v40 = vand.u32 4294901760, %v1517_v4  ;;  %3122 = vmatprep.mubr.msk.f32.mxu0 %vm3792_vm0, %v3793_v1  ;;  %3531 = vmatpush3.bf16.msra.mxu0 %v3530_v11 }
 0x1ff   :  { %3532 = vmatprep.subr.bf16.mxu0 %v3791_v0 }
 0x200   :  { %v840_v14 = vsub.f32 %v4235_v24, %v839_v62  ;;  %v3533_v60 = vpack.c.bf16 %v1518_v40, %v1511_v39 }
 0x202   :  { %v841_v22 = vand.u32 4294901760, %v840_v14  ;;  %3534 = vmatpush3.bf16.msra.mxu0 %v3533_v60 }
 0x203   :  { %3535 = vmatprep.subr.bf16.mxu0 %v3791_v0 }
 0x204   :  { %2926 = vmatmul.mubr.f32.vlgmr.msra.gmra.mrb[0].mxu1 %v841_v22 }
 0x205   :  { %3405 = vmatpush3.bf16.msra.mxu1 %v4043_v41  ;;  %2960 = vmatprep.mubr.msk.f32.mxu1 %vm3792_vm0, %v3793_v1  ;;  %v3548_v41 = vpack.c.bf16 %v1502_v19, %v1495_v45 }
 0x206   :  { %3406 = vmatprep.subr.bf16.mxu1 %v3791_v0  ;;  %3123 = vmatmul.mubr.f32.vlgmr.msra.gmra.mrb[2].mxu0 %v4203_v2 }
 0x207   :  { %3537 = vmatpush3.bf16.msra.mxu0 %v3536_v23  ;;  %3133 = vmatprep.mubr.msk.f32.mxu0 %vm3792_vm0, %v3793_v1 }
 0x208   :  { %3538 = vmatprep.subr.bf16.mxu0 %v3791_v0 }
 0x209   :  { %3408 = vmatpush3.bf16.msra.mxu1 %v4051_v57  ;;  %v3551_v57 = vpack.c.bf16 %v1516_v52, %v1509_v42 }
 0x20a   :  { %3409 = vmatprep.subr.bf16.mxu1 %v3791_v0 }
 0x20b   :  { %3540 = vmatpush3.bf16.msra.mxu0 %v3539_v7 }
 0x20c   :  { %3541 = vmatprep.subr.bf16.mxu0 %v3791_v0 }
 0x20d   :  { %3411 = vmatpush3.bf16.msra.mxu1 %v4058_v8 }
 0x20e   :  { %3412 = vmatprep.subr.bf16.mxu1 %v3791_v0  ;;  %3134 = vmatmul.mubr.f32.vlgmr.msra.gmra.mrb[2].mxu0 %v4215_v15 }
 0x20f   :  { %3543 = vmatpush3.bf16.msra.mxu0 %v4208_v5  ;;  %3144 = vmatprep.mubr.msk.f32.mxu0 %vm3792_vm0, %v3793_v1 }
 0x210   :  { %3544 = vmatprep.subr.bf16.mxu0 %v3791_v0 }
 0x211   :  { %3414 = vmatpush3.bf16.msra.mxu1 %v4065_v16 }
 0x212   :  { %3415 = vmatprep.subr.bf16.mxu1 %v3791_v0 }
 0x213   :  { %3546 = vmatpush3.bf16.msra.mxu0 %v4228_v20 }
 0x214   :  { %3547 = vmatprep.subr.bf16.mxu0 %v3791_v0 }
 0x215   :  { %3417 = vmatpush3.bf16.msra.mxu1 %v4071_v17 }
 0x216   :  { %3418 = vmatprep.subr.bf16.mxu1 %v3791_v0  ;;  %3145 = vmatmul.mubr.f32.vlgmr.msra.gmra.mrb[2].mxu0 %v4223_v46 }
 0x217   :  { %3549 = vmatpush3.bf16.msra.mxu0 %v3548_v41  ;;  %3155 = vmatprep.mubr.msk.f32.mxu0 %vm3792_vm0, %v3793_v1 }
 0x218   :  { %3550 = vmatprep.subr.bf16.mxu0 %v3791_v0 }
 0x219   :  { %3420 = vmatpush3.bf16.msra.mxu1 %v4077_v58 }
 0x21a   :  { %3421 = vmatprep.subr.bf16.mxu1 %v3791_v0 }
 0x21b   :  { %3552 = vmatpush3.bf16.msra.mxu0 %v3551_v57 }
 0x21c   :  { %3553 = vmatprep.subr.bf16.mxu0 %v3791_v0 }
 0x21d   :  { %3423 = vmatpush3.bf16.msra.mxu1 %v4082_v6 }
 0x21e   :  { %3424 = vmatprep.subr.bf16.mxu1 %v3791_v0  ;;  %3156 = vmatmul.mubr.f32.vlgmr.msra.gmra.mrb[2].mxu0 %v4203_v2 }
 0x21f   :  { %3555 = vmatpush3.bf16.msra.mxu0 %v4208_v5  ;;  %3166 = vmatprep.mubr.msk.f32.mxu0 %vm3792_vm0, %v3793_v1 }
 0x220   :  { %3556 = vmatprep.subr.bf16.mxu0 %v3791_v0 }
 0x221   :  { %3426 = vmatpush3.bf16.msra.mxu1 %v4086_v25 }
 0x222   :  { %3427 = vmatprep.subr.bf16.mxu1 %v3791_v0 }
 0x223   :  { %3558 = vmatpush3.bf16.msra.mxu0 %v4228_v20  ;;  %v2417_v20 = vld [vmem:[%s4428_s5] ss:$0 sm:$0xff] }
 0x224   :  { %2961 = vmatmul.mubr.f32.vlgmr.msra.gmra.mrb[0].mxu1 %v4226_v53 }
 0x225   :  { %3429 = vmatpush3.bf16.msra.mxu1 %v4092_v26  ;;  %2995 = vmatprep.mubr.msk.f32.mxu1 %vm3792_vm0, %v3793_v1 }
 0x226   :  { %3430 = vmatprep.subr.bf16.mxu1 %v3791_v0  ;;  %3167 = vmatmul.mubr.f32.vlgmr.msra.gmra.mrb[2].mxu0 %v4203_v2 }
 0x229   :  { %3432 = vmatpush3.bf16.msra.mxu1 %v4099_v10 }
 0x22a   :  { %3433 = vmatprep.subr.bf16.mxu1 %v3791_v0 }
 0x22d   :  { %3435 = vmatpush3.bf16.msra.mxu1 %v4107_v34 }
 0x22e   :  { %3436 = vmatprep.subr.bf16.mxu1 %v3791_v0 }
 0x231   :  { %3438 = vmatpush3.bf16.msra.mxu1 %v4113_v35 }
 0x232   :  { %3439 = vmatprep.subr.bf16.mxu1 %v3791_v0 }
 0x235   :  { %3441 = vmatpush3.bf16.msra.mxu1 %v4119_v43 }
 0x236   :  { %3442 = vmatprep.subr.bf16.mxu1 %v3791_v0 }
 0x239   :  { %3444 = vmatpush3.bf16.msra.mxu1 %v4125_v47 }
 0x23a   :  { %3445 = vmatprep.subr.bf16.mxu1 %v3791_v0 }
 0x23d   :  { %3447 = vmatpush3.bf16.msra.mxu1 %v4131_v48 }
 0x23e   :  { %3448 = vmatprep.subr.bf16.mxu1 %v3791_v0 }
 0x241   :  { %3450 = vmatpush3.bf16.msra.mxu1 %v4137_v54 }
 0x242   :  { %3451 = vmatprep.subr.bf16.mxu1 %v3791_v0 }
 0x244   :  { %2996 = vmatmul.mubr.f32.vlgmr.msra.gmra.mrb[0].mxu1 %v4235_v24 }
 0x245   :  { %3453 = vmatpush3.bf16.msra.mxu1 %v3916_v12  ;;  %3030 = vmatprep.mubr.msk.f32.mxu1 %vm3792_vm0, %v3793_v1 }
 0x246   :  { %3454 = vmatprep.subr.bf16.mxu1 %v3791_v0 }
 0x249   :  { %3456 = vmatpush3.bf16.msra.mxu1 %v3919_v13 }
 0x24a   :  { %3457 = vmatprep.subr.bf16.mxu1 %v3791_v0 }
 0x24d   :  { %3459 = vmatpush3.bf16.msra.mxu1 %v3925_v18 }
 0x24e   :  { %3460 = vmatprep.subr.bf16.mxu1 %v3791_v0 }
 0x251   :  { %3462 = vmatpush3.bf16.msra.mxu1 %v3936_v32 }
 0x252   :  { %3463 = vmatprep.subr.bf16.mxu1 %v3791_v0 }
 0x255   :  { %3465 = vmatpush3.bf16.msra.mxu1 %v3952_v44 }
 0x256   :  { %3466 = vmatprep.subr.bf16.mxu1 %v3791_v0 }
 0x259   :  { %3468 = vmatpush3.bf16.msra.mxu1 %v3963_v49 }
 0x25a   :  { %3469 = vmatprep.subr.bf16.mxu1 %v3791_v0 }
 0x25d   :  { %3471 = vmatpush3.bf16.msra.mxu1 %v3965_v50 }
 0x25e   :  { %3472 = vmatprep.subr.bf16.mxu1 %v3791_v0 }
 0x261   :  { %3474 = vmatpush3.bf16.msra.mxu1 %v3967_v51 }
 0x262   :  { %3475 = vmatprep.subr.bf16.mxu1 %v3791_v0 }
 0x264   :  { %3031 = vmatmul.mubr.f32.vlgmr.msra.gmra.mrb[0].mxu1 %v839_v62 }
 0x265   :  { %3477 = vmatpush3.bf16.msra.mxu1 %v4021_v27  ;;  %3065 = vmatprep.mubr.msk.f32.mxu1 %vm3792_vm0, %v3793_v1  ;;  %v1898_v27 = vld [vmem:[#allocation10] sm:$0xff] }
 0x266   :  { %3478 = vmatprep.subr.bf16.mxu1 %v3791_v0 }
 0x269   :  { %3480 = vmatpush3.bf16.msra.mxu1 %v4023_v28  ;;  %v1899_v28 = vld [vmem:[#allocation10 + $0x8] sm:$0xff] }
 0x26a   :  { %3481 = vmatprep.subr.bf16.mxu1 %v3791_v0 }
 0x26d   :  { %3483 = vmatpush3.bf16.msra.mxu1 %v4025_v29  ;;  %v1913_v29 = vand.u32 4294901760, %v1899_v28 }
 0x26e   :  { %3484 = vmatprep.subr.bf16.mxu1 %v3791_v0 }
 0x271   :  { %3486 = vmatpush3.bf16.msra.mxu1 %v4028_v30  ;;  %v1900_v30 = vld [vmem:[#allocation10 + $0x10] sm:$0xff] }
 0x272   :  { %3487 = vmatprep.subr.bf16.mxu1 %v3791_v0 }
 0x275   :  { %3489 = vmatpush3.bf16.msra.mxu1 %v4030_v33 }
 0x276   :  { %3490 = vmatprep.subr.bf16.mxu1 %v3791_v0 }
 0x279   :  { %3492 = vmatpush3.bf16.msra.mxu1 %v4032_v36  ;;  %v1916_v36 = vand.u32 4294901760, %v1900_v30 }
 0x27a   :  { %3493 = vmatprep.subr.bf16.mxu1 %v3791_v0 }
 0x27d   :  { %3495 = vmatpush3.bf16.msra.mxu1 %v4034_v37 }
 0x27e   :  { %3496 = vmatprep.subr.bf16.mxu1 %v3791_v0 }
 0x281   :  { %3498 = vmatpush3.bf16.msra.mxu1 %v4037_v38 }
 0x282   :  { %3499 = vmatprep.subr.bf16.mxu1 %v3791_v0 }
 0x284   :  { %3066 = vmatmul.mubr.f32.vlgmr.msra.gmra.mrb[0].mxu1 %v4226_v53 }
 0x285   :  { %3501 = vmatpush3.bf16.msra.mxu1 %v3916_v12  ;;  %3100 = vmatprep.mubr.msk.f32.mxu1 %vm3792_vm0, %v3793_v1  ;;  %v1910_v12 = vand.u32 4294901760, %v1898_v27 }
 0x286   :  { %3502 = vmatprep.subr.bf16.mxu1 %v3791_v0 }
 0x287   :  { %v1990_v33 = vsub.f32 %v1898_v27, %v1910_v12  ;;  %v3560_v16 = vpack.c.bf16 %v1913_v29, %v1910_v12 }
 0x289   :  { %3504 = vmatpush3.bf16.msra.mxu1 %v3919_v13  ;;  %v1901_v13 = vld [vmem:[#allocation10 + $0x18] sm:$0xff]  ;;  %v1991_v8 = vand.u32 4294901760, %v1990_v33 }
 0x28a   :  { %3505 = vmatprep.subr.bf16.mxu1 %v3791_v0  ;;  %v1919_v37 = vand.u32 4294901760, %v1901_v13 }
 0x28b   :  { %v1992_v17 = vsub.f32 %v1990_v33, %v1991_v8 }
 0x28c   :  { %v2011_v38 = vsub.f32 %v1901_v13, %v1919_v37  ;;  %v3563_v25 = vpack.c.bf16 %v1919_v37, %v1916_v36 }
 0x28d   :  { %3507 = vmatpush3.bf16.msra.mxu1 %v3925_v18  ;;  %v1997_v18 = vsub.f32 %v1899_v28, %v1913_v29 }
 0x28e   :  { %3508 = vmatprep.subr.bf16.mxu1 %v3791_v0  ;;  %v2012_v6 = vand.u32 4294901760, %v2011_v38 }
 0x28f   :  { %v3572_v48 = vpack.c.bf16 %v1997_v18, %v1990_v33 }
 0x290   :  { %v2013_v34 = vsub.f32 %v2011_v38, %v2012_v6 }
 0x291   :  { %3510 = vmatpush3.bf16.msra.mxu1 %v3936_v32  ;;  %v2004_v32 = vsub.f32 %v1900_v30, %v1916_v36 }
 0x292   :  { %3511 = vmatprep.subr.bf16.mxu1 %v3791_v0  ;;  %v2014_v43 = vand.u32 4294901760, %v2013_v34 }
 0x293   :  { %v3575_v54 = vpack.c.bf16 %v2011_v38, %v2004_v32 }
 0x295   :  { %3513 = vmatpush3.bf16.msra.mxu1 %v3952_v44  ;;  %v1998_v44 = vand.u32 4294901760, %v1997_v18 }
 0x296   :  { %3514 = vmatprep.subr.bf16.mxu1 %v3791_v0 }
 0x297   :  { %v1999_v58 = vsub.f32 %v1997_v18, %v1998_v44  ;;  %v3584_v5 = vpack.c.bf16 %v1998_v44, %v1991_v8 }
 0x299   :  { %3516 = vmatpush3.bf16.msra.mxu1 %v3963_v49  ;;  %v2005_v49 = vand.u32 4294901760, %v2004_v32  ;;  %v2000_v26 = vand.u32 4294901760, %v1999_v58 }
 0x29a   :  { %3517 = vmatprep.subr.bf16.mxu1 %v3791_v0 }
 0x29b   :  { %v2006_v10 = vsub.f32 %v2004_v32, %v2005_v49  ;;  %v3587_v31 = vpack.c.bf16 %v2012_v6, %v2005_v49 }
 0x29d   :  { %3519 = vmatpush3.bf16.msra.mxu1 %v3965_v50  ;;  %v1993_v50 = vand.u32 4294901760, %v1992_v17  ;;  %v2007_v35 = vand.u32 4294901760, %v2006_v10 }
 0x29e   :  { %3520 = vmatprep.subr.bf16.mxu1 %v3791_v0 }
 0x29f   :  { %v3569_v47 = vpack.c.bf16 %v2014_v43, %v2007_v35 }
 0x2a1   :  { %3522 = vmatpush3.bf16.msra.mxu1 %v3967_v51  ;;  %v3566_v51 = vpack.c.bf16 %v2000_v26, %v1993_v50 }
 0x2a2   :  { %3559 = vmatprep.subr.bf16.mxu1 %v3791_v0 }
 0x2a4   :  { %3101 = vmatmul.mubr.f32.vlgmr.msra.gmra.mrb[0].mxu1 %v4226_v53 }
 0x2a5   :  { %3561 = vmatpush3.bf16.msra.mxu1 %v3560_v16  ;;  %3177 = vmatprep.mubr.msk.f32.mxu1 %vm3792_vm0, %v3793_v1 }
 0x2a6   :  { %3562 = vmatprep.subr.bf16.mxu1 %v3791_v0 }
 0x2a9   :  { %3564 = vmatpush3.bf16.msra.mxu1 %v3563_v25 }
 0x2aa   :  { %3565 = vmatprep.subr.bf16.mxu1 %v3791_v0 }
 0x2ac   :  { %3178 = vmatmul.mubr.f32.vlgmr.msra.gmra.mrb[2].mxu1 %v4238_v55 }
 0x2ad   :  { %3567 = vmatpush3.bf16.msra.mxu1 %v3566_v51  ;;  %3188 = vmatprep.mubr.msk.f32.mxu1 %vm3792_vm0, %v3793_v1 }
 0x2ae   :  { %3568 = vmatprep.subr.bf16.mxu1 %v3791_v0 }
 0x2b1   :  { %3570 = vmatpush3.bf16.msra.mxu1 %v3569_v47 }
 0x2b2   :  { %3571 = vmatprep.subr.bf16.mxu1 %v3791_v0 }
 0x2b4   :  { %3189 = vmatmul.mubr.f32.vlgmr.msra.gmra.mrb[4].mxu1 %v4203_v2 }
 0x2b5   :  { %3573 = vmatpush3.bf16.msra.mxu1 %v3572_v48  ;;  %3199 = vmatprep.mubr.msk.f32.mxu1 %vm3792_vm0, %v3793_v1 }
 0x2b6   :  { %3574 = vmatprep.subr.bf16.mxu1 %v3791_v0 }
 0x2b9   :  { %3576 = vmatpush3.bf16.msra.mxu1 %v3575_v54 }
 0x2ba   :  { %3577 = vmatprep.subr.bf16.mxu1 %v3791_v0 }
 0x2bc   :  { %3200 = vmatmul.mubr.f32.vlgmr.msra.gmra.mrb[6].mxu1 %v4215_v15 }
 0x2bd   :  { %3579 = vmatpush3.bf16.msra.mxu1 %v3560_v16  ;;  %3210 = vmatprep.mubr.msk.f32.mxu1 %vm3792_vm0, %v3793_v1 }
 0x2be   :  { %3580 = vmatprep.subr.bf16.mxu1 %v3791_v0 }
 0x2c1   :  { %3582 = vmatpush3.bf16.msra.mxu1 %v3563_v25 }
 0x2c2   :  { %3583 = vmatprep.subr.bf16.mxu1 %v3791_v0 }
 0x2c4   :  { %3211 = vmatmul.mubr.f32.vlgmr.msra.gmra.mrb[8].mxu1 %v4223_v46 }
 0x2c5   :  { %3585 = vmatpush3.bf16.msra.mxu1 %v3584_v5  ;;  %3221 = vmatprep.mubr.msk.f32.mxu1 %vm3792_vm0, %v3793_v1 }
 0x2c6   :  { %3586 = vmatprep.subr.bf16.mxu1 %v3791_v0 }
 0x2c9   :  { %3588 = vmatpush3.bf16.msra.mxu1 %v3587_v31 }
 0x2ca   :  { %3589 = vmatprep.subr.bf16.mxu1 %v3791_v0 }
 0x2cc   :  { %3222 = vmatmul.mubr.f32.vlgmr.msra.gmra.mrb[10].mxu1 %v4203_v2 }
 0x2cd   :  { %3591 = vmatpush3.bf16.msra.mxu1 %v3560_v16  ;;  %3232 = vmatprep.mubr.msk.f32.mxu1 %vm3792_vm0, %v3793_v1 }
 0x2ce   :  { %3592 = vmatprep.subr.bf16.mxu1 %v3791_v0  ;;  %v2418_v0 = vld [vmem:[%s4429_s6] ss:$0 sm:$0xff] }
 0x2d1   :  { %3594 = vmatpush3.bf16.msra.mxu1 %v3563_v25 }
 0x2d4   :  { %3233 = vmatmul.mubr.f32.vlgmr.msra.gmra.mrb[12].mxu1 %v4203_v2 }
 0x2f9   :  { %v1894_v9 = vpop.f32.mrb[2].mxu0 }
 0x2fa   :  { %v3168_v15 = vpop.f32.mrb[3].mxu0  ;;  %v3596_v21 = vadd.f32 %v2417_v20, %v1894_v9 }
 0x377   :  { %v1393_v45 = vpop.f32.mrb[0].mxu1 }
 0x378   :  { %v3595_v46 = vadd.f32 1e-12, %v1393_v45  ;;  %v3102_v19 = vpop.f32.mrb[1].mxu1 }
 0x37a   :  { %3640 = vrsqrt.f32 %v3595_v46 }
 0x37f   :  { %v1984_v53 = vpop.f32.mrb[2].mxu1 }
 0x380   :  { %v3179_v56 = vpop.f32.mrb[3].mxu1  ;;  %v1985_v2 = vadd.f32 %v2418_v0, %v1984_v53 }
 0x384   :  { %v3641_v1 = vpop.eup %3640 }
 0x385   :  { %v2394_v24 = vmul.f32 %v3641_v1, %v3596_v21 }
 0x387   :  { %v2075_v42 = vpop.f32.mrb[4].mxu1  ;;  %v2395_v23 = vmul.f32 %v2394_v24, %v4206_v3 }
 0x388   :  { %v2076_v52 = vadd.f32 %v2075_v42, %v1985_v2  ;;  %v3190_v55 = vpop.f32.mrb[5].mxu1 }
 0x38f   :  { %v2155_v59 = vpop.f32.mrb[6].mxu1 }
 0x390   :  { %v2156_v61 = vadd.f32 %v2155_v59, %v2076_v52  ;;  %v3201_v62 = vpop.f32.mrb[7].mxu1 }
 0x397   :  { %v2232_v63 = vpop.f32.mrb[8].mxu1 }
 0x398   :  { %v2233_v4 = vadd.f32 %v2232_v63, %v2156_v61  ;;  %v3212_v11 = vpop.f32.mrb[9].mxu1 }
 0x39f   :  { %v2315_v14 = vpop.f32.mrb[10].mxu1 }
 0x3a0   :  { %v2316_v39 = vadd.f32 %v2315_v14, %v2233_v4  ;;  %v3223_v40 = vpop.f32.mrb[11].mxu1 }
 0x3a7   :  { %v2390_v22 = vpop.f32.mrb[12].mxu1 }
 0x3a8   :  { %v2391_v60 = vadd.f32 %v2390_v22, %v2316_v39  ;;  %v3234_v7 = vpop.f32.mrb[13].mxu1 }
 0x3aa   :  { %v2396_v41 = vadd.f32 %v2395_v23, %v2391_v60 }
 0x3ac   :  { %2397 = vst [vmem:[#allocation11] sm:$0xff] %v2396_v41 }
 0x3ad   :  { %2402 = vsyncadd [#allocation4], 64  ;;  %s3794_s5 = smov [#allocation11]  }
 0x3ae   :  { %s2403_s6 = sshll.u32 %s3794_s5, 4  ;;  %s2404_s6 = int_to_ptr.vmem [resolvable:$true] %s2403_s6 }
 0x3af   :  { %s3752_s22 = scalar_lea.vmem %s2404_s6, 64  ;;  %s3756_s23 = scalar_lea.vmem %s2404_s6, 128 }
 0x3b0   :  { %p3753_p12 = scmp.ne.s32.totalorder %s2404_s6, %s3752_s22  ;;  %p3757_p13 = scmp.lt.s32.totalorder %s2404_s6, %s2404_s6 }
 0x3b1   :  { %p3758_p0 = scmp.lt.s32.totalorder %s3756_s23, %s3752_s22 }
 0x3b3   :  { %p3759_p1 = por %p3758_p0, %p3757_p13 }
 0x3b5   :  { %p3760_p2 = pnand %p3759_p1, %p3753_p12 }
 0x3b7   :  { %3763 = shalt.err (!%p3760_p2)
}
 0x3b8   :  { %s3764_s0 = scalar_lea.hbm %s4430_s7, 64 }
 0x3b9   :  { %p3765_p3 = scmp.ne.s32.totalorder %s4430_s7, %s3764_s0  ;;  %p3768_p4 = scmp.lt.u32.totalorder %s3764_s0, %s4430_s7 }
 0x3bb   :  { %p3770_p5 = pnand %p3768_p4, %p3765_p3 }
 0x3bd   :  { %3773 = shalt.err (!%p3770_p5)
}
 0x3be   :  { %2409 = dma.vmem_to_hbm [thread:$0]  %s2404_s6, 64, %s4430_s7, [#allocation4], %s3783_s12, %s3783_s12, %s3784_s13  }
 0x3bf   :  { %3780 = dma.done.wait [#allocation4], 128  }
 0x3c0   :  { %3781 = vsyncadd [#allocation4], 4294967168 }
 0x3c1   :  { %2413 = vsyncpa [#allocation3], 1 }
 0x3c2   :  { %2414 = vsyncpa [#allocation6], 1 }
 0x3c3   :  { %2415 = vsyncpa [#allocation9], 1 }
 0x3c4   :  { %2416 = vsyncpa [#allocation4], 1 }

</bundles_post_ra>
